<compile_context>
chip_gen: v7x
topology: tpu7x:2x2x1
jax: 0.10.0
libtpu: 0.0.40
codegen_flags: <defaults>
</compile_context>

<pallas_src>
import functools
import jax
import jax.numpy as jnp
from jax.experimental import pallas as pl
from jax.experimental.pallas import tpu as pltpu


def _round_up(x, m):
    return (x + m - 1) // m * m


def _choose_tile(dim, cap, quantum):
    """Largest tile <= cap that divides `dim` and is a multiple of `quantum`,
    or the full dim when dim <= cap (full-dim blocks are always legal)."""
    if dim <= cap:
        return dim
    d = cap - cap % quantum
    while d >= quantum:
        if dim % d == 0:
            return d
        d -= quantum
    return dim  # fallback: full dim (never hit in this net)


# ----------------------------------------------------------------------------
# Pallas kernel 1: tiled MXU matmul with fused (BN affine + ReLU + residual)
# ----------------------------------------------------------------------------
def _mm_fused_kernel(*refs, relu, has_affine, has_residual):
    it = iter(refs)
    a_ref = next(it)
    b_ref = next(it)
    s_ref = next(it) if has_affine else None
    t_ref = next(it) if has_affine else None
    r_ref = next(it) if has_residual else None
    o_ref = next(it)
    acc_ref = next(it)

    @pl.when(pl.program_id(2) == 0)
    def _():
        acc_ref[...] = jnp.zeros_like(acc_ref)

    acc_ref[...] += jnp.dot(a_ref[...], b_ref[...],
                            preferred_element_type=jnp.float32)

    @pl.when(pl.program_id(2) == pl.num_programs(2) - 1)
    def _():
        y = acc_ref[...]
        if has_affine:
            y = y * s_ref[...] + t_ref[...]
        if relu:
            y = jnp.maximum(y, 0.0)
        if has_residual:
            y = y + r_ref[...]
        o_ref[...] = y.astype(o_ref.dtype)


def pallas_matmul_fused(a, b, scale=None, shift=None, residual=None, relu=False):
    """a: (M, K) bf16, b: (K', N) bf16 pre-packed weight (K' >= K, zero-padded).
    Optional fused epilogue: y*scale + shift (per column), ReLU, + residual.
    Returns (M, N) f32."""
    M, K = a.shape
    Kb, N = b.shape
    if Kb != K:                       # weight K was padded (to mult. of 16) at init
        a = jnp.pad(a, ((0, 0), (0, Kb - K)))
        K = Kb

    tk = _choose_tile(K, 2048, 128)
    tn = _choose_tile(N, 1024, 128)   # keeps >=2 N-blocks on the big GEMMs (v7x 2-TC)

    Mp = _round_up(M, 8)
    if Mp <= 512:
        tm = Mp
    else:
        tm = 256
        Mp = _round_up(M, tm)
    if Mp != M:
        a = jnp.pad(a, ((0, Mp - M), (0, 0)))
        if residual is not None:
            residual = jnp.pad(residual, ((0, Mp - M), (0, 0)))

    has_affine = scale is not None
    has_residual = residual is not None

    in_specs = [pl.BlockSpec((tm, tk), lambda i, j, k: (i, k)),
                pl.BlockSpec((tk, tn), lambda i, j, k: (k, j))]
    inputs = [a.astype(jnp.bfloat16), b]
    if has_affine:
        in_specs += [pl.BlockSpec((1, tn), lambda i, j, k: (0, j)),
                     pl.BlockSpec((1, tn), lambda i, j, k: (0, j))]
        inputs += [scale.reshape(1, N).astype(jnp.float32),
                   shift.reshape(1, N).astype(jnp.float32)]
    if has_residual:
        in_specs += [pl.BlockSpec((tm, tn), lambda i, j, k: (i, j))]
        inputs += [residual.astype(jnp.float32)]

    kernel = functools.partial(_mm_fused_kernel, relu=relu,
                               has_affine=has_affine, has_residual=has_residual)

    out = pl.pallas_call(
        kernel,
        out_shape=jax.ShapeDtypeStruct((Mp, N), jnp.float32),
        grid_spec=pltpu.PrefetchScalarGridSpec(
            num_scalar_prefetch=0,
            grid=(Mp // tm, N // tn, K // tk),
            in_specs=in_specs,
            out_specs=pl.BlockSpec((tm, tn), lambda i, j, k: (i, j)),
            scratch_shapes=[pltpu.VMEM((tm, tn), jnp.float32)]),
        compiler_params=pltpu.CompilerParams(
            dimension_semantics=("parallel", "parallel", "arbitrary"),
            vmem_limit_bytes=48 * 1024 * 1024),
    )(*inputs)
    return out[:M] if Mp != M else out


# ----------------------------------------------------------------------------
# Pallas kernel 2: row-tiled fused affine (BatchNorm, eval) + ReLU
# ----------------------------------------------------------------------------
def _bn_kernel(x_ref, s_ref, b_ref, o_ref, *, relu):
    y = x_ref[...] * s_ref[...] + b_ref[...]
    if relu:
        y = jnp.maximum(y, 0.0)
    o_ref[...] = y


def pallas_bn(x_nhwc, bn, relu=True):
    N, H, W, C = x_nhwc.shape
    M = N * H * W
    x2 = x_nhwc.reshape(M, C).astype(jnp.float32)

    # Row tile sized so a block stays <= ~2 MiB (pipelinable, v7x-safe).
    cap_rows = max(8, (2 * 1024 * 1024 // (4 * C)) // 8 * 8)
    tm = min(_round_up(M, 8), cap_rows)
    Mp = _round_up(M, tm)
    if Mp != M:
        x2 = jnp.pad(x2, ((0, Mp - M), (0, 0)))

    out = pl.pallas_call(
        functools.partial(_bn_kernel, relu=relu),
        out_shape=jax.ShapeDtypeStruct((Mp, C), jnp.float32),
        grid_spec=pltpu.PrefetchScalarGridSpec(
            num_scalar_prefetch=0,
            grid=(Mp // tm,),
            in_specs=[pl.BlockSpec((tm, C), lambda i: (i, 0)),
                      pl.BlockSpec((1, C), lambda i: (0, 0)),
                      pl.BlockSpec((1, C), lambda i: (0, 0))],
            out_specs=pl.BlockSpec((tm, C), lambda i: (i, 0))),
        compiler_params=pltpu.CompilerParams(
            dimension_semantics=("parallel",)),
    )(x2, bn['scale'].reshape(1, C), bn['shift'].reshape(1, C))
    out = out[:M] if Mp != M else out
    return out.reshape(N, H, W, C)


# ----------------------------------------------------------------------------
# Convolution = im2col glue (bf16) + fused Pallas matmul
# ----------------------------------------------------------------------------
def conv2d_nhwc(x, w, stride=1, padding=0, dilation=1,
                affine=None, relu=False, residual=None):
    """x: (N,H,W,Cin) f32; w: packed weight dict ('wm' (Kpad, Cout) bf16)."""
    kh, kw, cin, cout = w['kh'], w['kw'], w['cin'], w['cout']
    N, H, W, _ = x.shape
    xb = x.astype(jnp.bfloat16)

    if kh == 1 and kw == 1 and padding == 0:
        xs = xb[:, ::stride, ::stride, :]
        _, Hout, Wout, _ = xs.shape
        a = xs.reshape(-1, cin)
    else:
        Hout = (H + 2 * padding - dilation * (kh - 1) - 1) // stride + 1
        Wout = (W + 2 * padding - dilation * (kw - 1) - 1) // stride + 1
        xp = jnp.pad(xb, ((0, 0), (padding, padding), (padding, padding), (0, 0)))
        patches = []
        for ki in range(kh):
            for kj in range(kw):
                patches.append(
                    xp[:,
                       ki * dilation: ki * dilation + stride * (Hout - 1) + 1: stride,
                       kj * dilation: kj * dilation + stride * (Wout - 1) + 1: stride,
                       :])
        a = jnp.concatenate(patches, axis=-1).reshape(-1, kh * kw * cin)

    scale = affine['scale'] if affine is not None else None
    shift = affine['shift'] if affine is not None else None
    r2 = residual.reshape(-1, cout) if residual is not None else None
    y = pallas_matmul_fused(a, w['wm'], scale=scale, shift=shift,
                            residual=r2, relu=relu)
    return y.reshape(N, Hout, Wout, cout)


# ----------------------------------------------------------------------------
# Deterministic parameter construction (pre-packed / pre-folded)
# ----------------------------------------------------------------------------
def init_bn(key, c, eps=1e-5):
    k1, k2, k3, k4 = jax.random.split(key, 4)
    gamma = 1.0 + 0.1 * jax.random.normal(k1, (c,), jnp.float32)
    beta = 0.1 * jax.random.normal(k2, (c,), jnp.float32)
    mean = 0.1 * jax.random.normal(k3, (c,), jnp.float32)
    var = 0.5 + jax.random.uniform(k4, (c,), jnp.float32)
    scale = gamma * jax.lax.rsqrt(var + eps)
    shift = beta - mean * scale
    return dict(scale=scale, shift=shift)


def init_conv(key, cout, cin, k):
    fan_in = cin * k * k
    std = 0.5 / jnp.sqrt(jnp.float32(fan_in))
    w = std * jax.random.normal(key, (cout, cin, k, k), jnp.float32)  # OIHW
    K = k * k * cin
    wm = jnp.transpose(w, (2, 3, 1, 0)).reshape(K, cout)              # (K, Cout)
    Kp = _round_up(K, 16)
    if Kp != K:                                   # pad irregular K (e.g. 27) once
        wm = jnp.pad(wm, ((0, Kp - K), (0, 0)))
    return dict(wm=wm.astype(jnp.bfloat16), kh=k, kw=k, cin=cin, cout=cout)


def init_resblock(key, cin, cmid, cout, stride=1, first_dilation=None, dilation=1):
    same = (cin == cout and stride == 1)
    if first_dilation is None:
        first_dilation = dilation
    ks = jax.random.split(key, 5)
    p = dict(same=same, stride=stride, fd=first_dilation, d=dilation,
             bn2a=init_bn(ks[0], cin),
             conv2a=init_conv(ks[1], cmid, cin, 3),
             bn2b1=init_bn(ks[2], cmid),
             conv2b1=init_conv(ks[3], cout, cmid, 3))
    if not same:
        p['conv1'] = init_conv(ks[4], cout, cin, 1)
    return p


def init_bottleneck(key, cin, cout, stride=1, dilation=1):
    same = (cin == cout and stride == 1)
    ks = jax.random.split(key, 7)
    p = dict(same=same, stride=stride, d=dilation,
             bn2a=init_bn(ks[0], cin),
             conv2a=init_conv(ks[1], cout // 4, cin, 1),
             bn2b1=init_bn(ks[2], cout // 4),
             conv2b1=init_conv(ks[3], cout // 2, cout // 4, 3),
             bn2b2=init_bn(ks[4], cout // 2),
             conv2b2=init_conv(ks[5], cout, cout // 2, 1),
             conv1=init_conv(ks[6], cout, cin, 1))
    return p


# ----------------------------------------------------------------------------
# Block forward passes (mirror the PyTorch modules; BN/ReLU/residual fused)
# ----------------------------------------------------------------------------
def resblock_fwd(p, x, get_x_bn_relu=False):
    br2 = pallas_bn(x, p['bn2a'], relu=True)
    x_bn_relu = br2
    br1 = x if p['same'] else conv2d_nhwc(br2, p['conv1'], stride=p['stride'])
    # conv2a with bn2b1 + ReLU fused into the matmul epilogue
    br2 = conv2d_nhwc(br2, p['conv2a'], stride=p['stride'],
                      padding=p['fd'], dilation=p['fd'],
                      affine=p['bn2b1'], relu=True)
    # conv2b1 with the residual add fused into the matmul epilogue
    out = conv2d_nhwc(br2, p['conv2b1'], padding=p['d'], dilation=p['d'],
                      residual=br1)
    return (out, x_bn_relu) if get_x_bn_relu else out


def bottleneck_fwd(p, x, get_x_bn_relu=False):
    # TODO(synk): Dropout2d is training-mode only; in eval it is the identity.
    br2 = pallas_bn(x, p['bn2a'], relu=True)
    x_bn_relu = br2
    br1 = conv2d_nhwc(br2, p['conv1'], stride=p['stride'])
    br2 = conv2d_nhwc(br2, p['conv2a'], stride=p['stride'],
                      affine=p['bn2b1'], relu=True)
    br2 = conv2d_nhwc(br2, p['conv2b1'], padding=p['d'], dilation=p['d'],
                      affine=p['bn2b2'], relu=True)
    out = conv2d_nhwc(br2, p['conv2b2'], stride=p['stride'], residual=br1)
    return (out, x_bn_relu) if get_x_bn_relu else out


def init_net(key):
    ks = iter(jax.random.split(key, 32))
    P = {}
    P['conv1a'] = init_conv(next(ks), 64, 3, 3)
    P['b2'] = init_resblock(next(ks), 64, 128, 128, stride=2)
    P['b2_1'] = init_resblock(next(ks), 128, 128, 128)
    P['b2_2'] = init_resblock(next(ks), 128, 128, 128)
    P['b3'] = init_resblock(next(ks), 128, 256, 256, stride=2)
    P['b3_1'] = init_resblock(next(ks), 256, 256, 256)
    P['b3_2'] = init_resblock(next(ks), 256, 256, 256)
    P['b4'] = init_resblock(next(ks), 256, 512, 512, stride=2)
    P['b4_1'] = init_resblock(next(ks), 512, 512, 512)
    P['b4_2'] = init_resblock(next(ks), 512, 512, 512)
    P['b4_3'] = init_resblock(next(ks), 512, 512, 512)
    P['b4_4'] = init_resblock(next(ks), 512, 512, 512)
    P['b4_5'] = init_resblock(next(ks), 512, 512, 512)
    P['b5'] = init_resblock(next(ks), 512, 512, 1024, stride=1,
                            first_dilation=1, dilation=2)
    P['b5_1'] = init_resblock(next(ks), 1024, 512, 1024, dilation=2)
    P['b5_2'] = init_resblock(next(ks), 1024, 512, 1024, dilation=2)
    P['b6'] = init_bottleneck(next(ks), 1024, 2048, stride=1, dilation=4)
    P['b7'] = init_bottleneck(next(ks), 2048, 4096, dilation=4)
    P['bn7'] = init_bn(next(ks), 4096)
    # imutils.Normalize from __init__ is never used in forward() -> omitted.
    return P


def net_forward(P, x_nchw):
    x = jnp.transpose(x_nchw, (0, 2, 3, 1)).astype(jnp.float32)  # NCHW -> NHWC
    x = conv2d_nhwc(x, P['conv1a'], padding=1)
    x = resblock_fwd(P['b2'], x)
    x = resblock_fwd(P['b2_1'], x)
    x = resblock_fwd(P['b2_2'], x)
    x = resblock_fwd(P['b3'], x)
    x = resblock_fwd(P['b3_1'], x)
    x = resblock_fwd(P['b3_2'], x)
    x = resblock_fwd(P['b4'], x)
    x = resblock_fwd(P['b4_1'], x)
    x = resblock_fwd(P['b4_2'], x)
    x = resblock_fwd(P['b4_3'], x)
    x = resblock_fwd(P['b4_4'], x)
    x = resblock_fwd(P['b4_5'], x)
    x, conv4 = resblock_fwd(P['b5'], x, get_x_bn_relu=True)
    x = resblock_fwd(P['b5_1'], x)
    x = resblock_fwd(P['b5_2'], x)
    x, conv5 = bottleneck_fwd(P['b6'], x, get_x_bn_relu=True)
    x = bottleneck_fwd(P['b7'], x)
    conv6 = pallas_bn(x, P['bn7'], relu=True)   # bn7 in eval mode + ReLU
    to_nchw = lambda t: jnp.transpose(t, (0, 3, 1, 2))
    return {'conv4': to_nchw(conv4), 'conv5': to_nchw(conv5),
            'conv6': to_nchw(conv6)}


if __name__ == "__main__":
    key = jax.random.PRNGKey(0)
    k_param, k_x = jax.random.split(key)
    params = init_net(k_param)
    # input: NCHW, batch=2, 3 channels (required by conv1a), 16x16 spatial
    x = jax.random.normal(k_x, (2, 3, 16, 16), jnp.float32)

    out = net_forward(params, x)
    jax.block_until_ready(out['conv6'])

    assert out['conv4'].shape == (2, 512, 2, 2)
    assert out['conv5'].shape == (2, 1024, 2, 2)
    assert out['conv6'].shape == (2, 4096, 2, 2)
    assert bool(jnp.isfinite(out['conv4']).all())
    assert bool(jnp.isfinite(out['conv5']).all())
    assert bool(jnp.isfinite(out['conv6']).all())
    print("KERNEL_OK")
</pallas_src>

<mosaic_0001>
module attributes {stable_mosaic.version = 11 : i64} {
  func.func @_mm_fused_kernel(%arg0: i32, %arg1: i32, %arg2: i32, %arg3: memref<512x32xbf16, #tpu.memory_space<vmem>>, %arg4: memref<32x64xbf16, #tpu.memory_space<vmem>>, %arg5: memref<512x64xf32, #tpu.memory_space<vmem>>, %arg6: memref<512x64xf32, #tpu.memory_space<vmem>>) attributes {dimension_semantics = [#tpu.dimension_semantics<parallel>, #tpu.dimension_semantics<parallel>, #tpu.dimension_semantics<arbitrary>], iteration_bounds = array<i64: 1, 1, 1>, scalar_prefetch = 0 : i64, scratch_operands = 1 : i64, tpu.core_type = #tpu.core_type<tc>, window_params = [{transform_indices = @transform_0, window_bounds = array<i64: 512, 32>}, {transform_indices = @transform_1, window_bounds = array<i64: 32, 64>}, {transform_indices = @transform_2, window_bounds = array<i64: 512, 64>}]} {
    %c0_i32 = arith.constant 0 : i32
    %0 = arith.cmpi eq, %arg2, %c0_i32 : i32
    %1 = arith.extui %0 : i1 to i32
    %c0_i32_0 = arith.constant 0 : i32
    %2 = arith.cmpi ne, %1, %c0_i32_0 : i32
    scf.if %2 {
      %cst_10 = arith.constant 0.000000e+00 : f32
      %12 = vector.broadcast %cst_10 : f32 to vector<512x64xf32>
      %c0_11 = arith.constant 0 : index
      %c0_12 = arith.constant 0 : index
      %13 = vector.load %arg6[%c0_11, %c0_12] : memref<512x64xf32, #tpu.memory_space<vmem>>, vector<512x64xf32>
      tpu.vector_store %arg6[%c0_11, %c0_12], %12 {strides = array<i32>} : memref<512x64xf32, #tpu.memory_space<vmem>>, vector<512x64xf32>,
    } else {
    }
    %c0 = arith.constant 0 : index
    %c0_1 = arith.constant 0 : index
    %3 = vector.load %arg6[%c0, %c0_1] : memref<512x64xf32, #tpu.memory_space<vmem>>, vector<512x64xf32>
    %c0_2 = arith.constant 0 : index
    %c0_3 = arith.constant 0 : index
    %4 = vector.load %arg3[%c0_2, %c0_3] : memref<512x32xbf16, #tpu.memory_space<vmem>>, vector<512x32xbf16>
    %c0_4 = arith.constant 0 : index
    %c0_5 = arith.constant 0 : index
    %5 = vector.load %arg4[%c0_4, %c0_5] : memref<32x64xbf16, #tpu.memory_space<vmem>>, vector<32x64xbf16>
    %cst = arith.constant dense<0.000000e+00> : vector<512x64xf32>
    %6 = tpu.matmul %4, %5, %cst {dimension_numbers = #tpu.dot_dimension_numbers<[1], [0], [0], [1], [0, 0, 1, 1], [], []>} : vector<512x32xbf16>, vector<32x64xbf16>, vector<512x64xf32> -> vector<512x64xf32>
    %7 = arith.addf %3, %6 : vector<512x64xf32>
    %c0_6 = arith.constant 0 : index
    %c0_7 = arith.constant 0 : index
    %8 = vector.load %arg6[%c0_6, %c0_7] : memref<512x64xf32, #tpu.memory_space<vmem>>, vector<512x64xf32>
    tpu.vector_store %arg6[%c0_6, %c0_7], %7 {strides = array<i32>} : memref<512x64xf32, #tpu.memory_space<vmem>>, vector<512x64xf32>,
    %c0_i32_8 = arith.constant 0 : i32
    %9 = arith.cmpi eq, %arg2, %c0_i32_8 : i32
    %10 = arith.extui %9 : i1 to i32
    %c0_i32_9 = arith.constant 0 : i32
    %11 = arith.cmpi ne, %10, %c0_i32_9 : i32
    scf.if %11 {
      %c0_10 = arith.constant 0 : index
      %c0_11 = arith.constant 0 : index
      %12 = vector.load %arg6[%c0_10, %c0_11] : memref<512x64xf32, #tpu.memory_space<vmem>>, vector<512x64xf32>
      %c0_12 = arith.constant 0 : index
      %c0_13 = arith.constant 0 : index
      %13 = vector.load %arg5[%c0_12, %c0_13] : memref<512x64xf32, #tpu.memory_space<vmem>>, vector<512x64xf32>
      tpu.vector_store %arg5[%c0_12, %c0_13], %12 {strides = array<i32>} : memref<512x64xf32, #tpu.memory_space<vmem>>, vector<512x64xf32>,
    } else {
    }
    return
  }
  func.func @transform_0(%arg0: i32, %arg1: i32, %arg2: i32) -> (i32, i32) {
    %c0_i32 = arith.constant 0 : i32
    return %arg0, %arg2 : i32, i32
  }
  func.func @transform_1(%arg0: i32, %arg1: i32, %arg2: i32) -> (i32, i32) {
    %c0_i32 = arith.constant 0 : i32
    return %arg2, %arg1 : i32, i32
  }
  func.func @transform_2(%arg0: i32, %arg1: i32, %arg2: i32) -> (i32, i32) {
    %c0_i32 = arith.constant 0 : i32
    return %arg0, %arg1 : i32, i32
  }
}

</mosaic_0001>

<bundles_post_ra>
// kernel: tpu_custom_call.1
= control target key start
LH: loop header
LB: loop body
LE: loop exit
PB: predicated region body
PF: predicated region fallthrough
CT: control target
= control target key end

     0   :  { %vm16_vm0 = vcmask 523264   ;;  %v1242_v1 = vmov 0.0   ;;  %vm385_vm1 = vcmask 261120   ;;  %s1846_s1 = inlined_call_operand.vmem [shape: bf16[32,64], index: 1, kind: input, shape index: {}]   ;;  %s1847_s0 = inlined_call_operand.vmem [shape: bf16[512,32], index: 0, kind: input, shape index: {}]   ;;  %s1848_s2 = inlined_call_operand.vmem [shape: f32[512,64], index: 2, kind: output, shape index: {}]  }
   0x1   :  { %v1261_v0 = vld [vmem:[%s1846_s1] sm:$0xff]   ;;  %19 = vst.msk [vmem:[#allocation2 + $0x10] sm:$0xff] %vm16_vm0, %v1242_v1  ;;  %17 = vst.msk [vmem:[#allocation2] sm:$0xff] %vm16_vm0, %v1242_v1  ;;  %v1209_v2 = vld [vmem:[%s1846_s1 + $0x8] sm:$0xff]  }
   0x2   :  { %18 = vst.msk [vmem:[#allocation2 + $0x8] sm:$0xff] %vm16_vm0, %v1242_v1  ;;  %20 = vst.msk [vmem:[#allocation2 + $0x18] sm:$0xff] %vm16_vm0, %v1242_v1  ;;  %1135 = vmatprep.subr.bf16.mxu0 %v1261_v0  ;;  %1203 = vmatprep.subr.bf16.mxu1 %v1261_v0  ;;  %v1210_v3 = vld [vmem:[%s1847_s0] sm:$0xff]   ;;  %v1212_v5 = vld [vmem:[%s1847_s0 + $0x8] sm:$0xff]  }
   0x3   :  { %21 = vst.msk [vmem:[#allocation2 + $0x20] sm:$0xff] %vm16_vm0, %v1242_v1  ;;  %22 = vst.msk [vmem:[#allocation2 + $0x28] sm:$0xff] %vm16_vm0, %v1242_v1  ;;  %1136 = vmatpush3.bf16.msra.mxu0 %v1261_v0  ;;  %1205 = vmatpush3.bf16.msra.mxu1 %v1261_v0  ;;  %v1211_v4 = vld [vmem:[%s1847_s0 + $0x80] sm:$0xff]   ;;  %v1213_v6 = vld [vmem:[%s1847_s0 + $0x88] sm:$0xff]  }
   0x4   :  { %23 = vst.msk [vmem:[#allocation2 + $0x30] sm:$0xff] %vm16_vm0, %v1242_v1  ;;  %24 = vst.msk [vmem:[#allocation2 + $0x38] sm:$0xff] %vm16_vm0, %v1242_v1  ;;  %1137 = vmatprep.subr.bf16.mxu0 %v1209_v2  ;;  %1204 = vmatprep.subr.bf16.mxu1 %v1209_v2  ;;  %v1214_v7 = vld [vmem:[%s1847_s0 + $0x10] sm:$0xff]   ;;  %v1216_v9 = vld [vmem:[%s1847_s0 + $0x18] sm:$0xff]  }
   0x5   :  { %25 = vst.msk [vmem:[#allocation2 + $0x40] sm:$0xff] %vm16_vm0, %v1242_v1  ;;  %26 = vst.msk [vmem:[#allocation2 + $0x48] sm:$0xff] %vm16_vm0, %v1242_v1  ;;  %1139 = vmatprep.mubr.msk.bf16.mxu0 %vm385_vm1, %v1210_v3  ;;  %1171 = vmatprep.mubr.msk.bf16.mxu1 %vm385_vm1, %v1211_v4  ;;  %v1215_v8 = vld [vmem:[%s1847_s0 + $0x90] sm:$0xff]   ;;  %v1217_v10 = vld [vmem:[%s1847_s0 + $0x98] sm:$0xff]  }
   0x6   :  { %27 = vst.msk [vmem:[#allocation2 + $0x50] sm:$0xff] %vm16_vm0, %v1242_v1  ;;  %28 = vst.msk [vmem:[#allocation2 + $0x58] sm:$0xff] %vm16_vm0, %v1242_v1  ;;  %v1218_v11 = vld [vmem:[%s1847_s0 + $0x20] sm:$0xff]   ;;  %v1220_v13 = vld [vmem:[%s1847_s0 + $0x28] sm:$0xff]  }
   0x7   :  { %29 = vst.msk [vmem:[#allocation2 + $0x60] sm:$0xff] %vm16_vm0, %v1242_v1  ;;  %30 = vst.msk [vmem:[#allocation2 + $0x68] sm:$0xff] %vm16_vm0, %v1242_v1  ;;  %1138 = vmatpush3.bf16.msra.mxu0 %v1209_v2  ;;  %1206 = vmatpush3.bf16.msra.mxu1 %v1209_v2  ;;  %v1219_v12 = vld [vmem:[%s1847_s0 + $0xa0] sm:$0xff]   ;;  %v1221_v14 = vld [vmem:[%s1847_s0 + $0xa8] sm:$0xff]  }
   0x8   :  { %31 = vst.msk [vmem:[#allocation2 + $0x70] sm:$0xff] %vm16_vm0, %v1242_v1  ;;  %32 = vst.msk [vmem:[#allocation2 + $0x78] sm:$0xff] %vm16_vm0, %v1242_v1  ;;  %v1222_v15 = vld [vmem:[%s1847_s0 + $0x30] sm:$0xff]   ;;  %v1224_v17 = vld [vmem:[%s1847_s0 + $0x38] sm:$0xff]  }
   0x9   :  { %33 = vst.msk [vmem:[#allocation2 + $0x80] sm:$0xff] %vm16_vm0, %v1242_v1  ;;  %34 = vst.msk [vmem:[#allocation2 + $0x88] sm:$0xff] %vm16_vm0, %v1242_v1  ;;  %v1223_v16 = vld [vmem:[%s1847_s0 + $0xb0] sm:$0xff]   ;;  %v1225_v18 = vld [vmem:[%s1847_s0 + $0xb8] sm:$0xff]  }
   0xa   :  { %35 = vst.msk [vmem:[#allocation2 + $0x90] sm:$0xff] %vm16_vm0, %v1242_v1  ;;  %36 = vst.msk [vmem:[#allocation2 + $0x98] sm:$0xff] %vm16_vm0, %v1242_v1  ;;  %1140 = vmatmul.mubr.msk.bf16.vlgmr.msra.gmra.mrb[0].mxu0 %vm385_vm1, %v1212_v5  ;;  %1172 = vmatmul.mubr.msk.bf16.vlgmr.msra.gmra.mrb[0].mxu1 %vm385_vm1, %v1213_v6  ;;  %v1226_v19 = vld [vmem:[%s1847_s0 + $0x40] sm:$0xff]   ;;  %v1228_v21 = vld [vmem:[%s1847_s0 + $0x48] sm:$0xff]  }
   0xb   :  { %37 = vst.msk [vmem:[#allocation2 + $0xa0] sm:$0xff] %vm16_vm0, %v1242_v1  ;;  %38 = vst.msk [vmem:[#allocation2 + $0xa8] sm:$0xff] %vm16_vm0, %v1242_v1  ;;  %1143 = vmatprep.mubr.msk.bf16.mxu0 %vm385_vm1, %v1214_v7  ;;  %1175 = vmatprep.mubr.msk.bf16.mxu1 %vm385_vm1, %v1215_v8  ;;  %v1227_v20 = vld [vmem:[%s1847_s0 + $0xc0] sm:$0xff]   ;;  %v1229_v22 = vld [vmem:[%s1847_s0 + $0xc8] sm:$0xff]  }
   0xc   :  { %39 = vst.msk [vmem:[#allocation2 + $0xb0] sm:$0xff] %vm16_vm0, %v1242_v1  ;;  %40 = vst.msk [vmem:[#allocation2 + $0xb8] sm:$0xff] %vm16_vm0, %v1242_v1  ;;  %v1230_v23 = vld [vmem:[%s1847_s0 + $0x50] sm:$0xff]   ;;  %v1232_v25 = vld [vmem:[%s1847_s0 + $0x58] sm:$0xff]  }
   0xd   :  { %41 = vst.msk [vmem:[#allocation2 + $0xc0] sm:$0xff] %vm16_vm0, %v1242_v1  ;;  %42 = vst.msk [vmem:[#allocation2 + $0xc8] sm:$0xff] %vm16_vm0, %v1242_v1  ;;  %v1231_v24 = vld [vmem:[%s1847_s0 + $0xd0] sm:$0xff]   ;;  %v1233_v26 = vld [vmem:[%s1847_s0 + $0xd8] sm:$0xff]  }
   0xe   :  { %43 = vst.msk [vmem:[#allocation2 + $0xd0] sm:$0xff] %vm16_vm0, %v1242_v1  ;;  %44 = vst.msk [vmem:[#allocation2 + $0xd8] sm:$0xff] %vm16_vm0, %v1242_v1  ;;  %v1234_v27 = vld [vmem:[%s1847_s0 + $0x60] sm:$0xff]   ;;  %v1236_v29 = vld [vmem:[%s1847_s0 + $0x68] sm:$0xff]  }
   0xf   :  { %45 = vst.msk [vmem:[#allocation2 + $0xe0] sm:$0xff] %vm16_vm0, %v1242_v1  ;;  %46 = vst.msk [vmem:[#allocation2 + $0xe8] sm:$0xff] %vm16_vm0, %v1242_v1  ;;  %v1235_v28 = vld [vmem:[%s1847_s0 + $0xe0] sm:$0xff]   ;;  %v1237_v30 = vld [vmem:[%s1847_s0 + $0xe8] sm:$0xff]  }
  0x10   :  { %47 = vst.msk [vmem:[#allocation2 + $0xf0] sm:$0xff] %vm16_vm0, %v1242_v1  ;;  %48 = vst.msk [vmem:[#allocation2 + $0xf8] sm:$0xff] %vm16_vm0, %v1242_v1  ;;  %v1238_v31 = vld [vmem:[%s1847_s0 + $0x70] sm:$0xff]   ;;  %v1240_v33 = vld [vmem:[%s1847_s0 + $0x78] sm:$0xff]  }
  0x11   :  { %49 = vst.msk [vmem:[#allocation2 + $0x100] sm:$0xff] %vm16_vm0, %v1242_v1  ;;  %50 = vst.msk [vmem:[#allocation2 + $0x108] sm:$0xff] %vm16_vm0, %v1242_v1  ;;  %v1239_v32 = vld [vmem:[%s1847_s0 + $0xf0] sm:$0xff]   ;;  %v1241_v34 = vld [vmem:[%s1847_s0 + $0xf8] sm:$0xff]  }
  0x12   :  { %51 = vst.msk [vmem:[#allocation2 + $0x110] sm:$0xff] %vm16_vm0, %v1242_v1  ;;  %52 = vst.msk [vmem:[#allocation2 + $0x118] sm:$0xff] %vm16_vm0, %v1242_v1  ;;  %1144 = vmatmul.mubr.msk.bf16.gmra.mrb[4].mxu0 %vm385_vm1, %v1216_v9  ;;  %1176 = vmatmul.mubr.msk.bf16.gmra.mrb[4].mxu1 %vm385_vm1, %v1217_v10  ;;  %v83_v35 = vld [vmem:[#allocation2 + $0x10] sm:$0xff]  ;;  %v81_v37 = vld [vmem:[#allocation2] sm:$0xff] }
  0x13   :  { %53 = vst.msk [vmem:[#allocation2 + $0x120] sm:$0xff] %vm16_vm0, %v1242_v1  ;;  %54 = vst.msk [vmem:[#allocation2 + $0x128] sm:$0xff] %vm16_vm0, %v1242_v1  ;;  %1147 = vmatprep.mubr.msk.bf16.mxu0 %vm385_vm1, %v1218_v11  ;;  %1179 = vmatprep.mubr.msk.bf16.mxu1 %vm385_vm1, %v1219_v12  ;;  %v84_v41 = vld [vmem:[#allocation2 + $0x18] sm:$0xff]  ;;  %v82_v47 = vld [vmem:[#allocation2 + $0x8] sm:$0xff] }
  0x14   :  { %55 = vst.msk [vmem:[#allocation2 + $0x130] sm:$0xff] %vm16_vm0, %v1242_v1  ;;  %56 = vst.msk [vmem:[#allocation2 + $0x138] sm:$0xff] %vm16_vm0, %v1242_v1  ;;  %v87_v59 = vld [vmem:[#allocation2 + $0x30] sm:$0xff]  ;;  %v85_v61 = vld [vmem:[#allocation2 + $0x20] sm:$0xff] }
  0x15   :  { %57 = vst.msk [vmem:[#allocation2 + $0x140] sm:$0xff] %vm16_vm0, %v1242_v1  ;;  %58 = vst.msk [vmem:[#allocation2 + $0x148] sm:$0xff] %vm16_vm0, %v1242_v1  ;;  %v86_v7 = vld [vmem:[#allocation2 + $0x28] sm:$0xff] }
  0x16   :  { %59 = vst.msk [vmem:[#allocation2 + $0x150] sm:$0xff] %vm16_vm0, %v1242_v1  ;;  %60 = vst.msk [vmem:[#allocation2 + $0x158] sm:$0xff] %vm16_vm0, %v1242_v1 }
  0x17   :  { %61 = vst.msk [vmem:[#allocation2 + $0x160] sm:$0xff] %vm16_vm0, %v1242_v1  ;;  %62 = vst.msk [vmem:[#allocation2 + $0x168] sm:$0xff] %vm16_vm0, %v1242_v1 }
  0x18   :  { %63 = vst.msk [vmem:[#allocation2 + $0x170] sm:$0xff] %vm16_vm0, %v1242_v1  ;;  %64 = vst.msk [vmem:[#allocation2 + $0x178] sm:$0xff] %vm16_vm0, %v1242_v1  ;;  %v113_v38 = vld [vmem:[#allocation2 + $0x100] sm:$0xff]  ;;  %v114_v48 = vld [vmem:[#allocation2 + $0x108] sm:$0xff] }
  0x19   :  { %65 = vst.msk [vmem:[#allocation2 + $0x180] sm:$0xff] %vm16_vm0, %v1242_v1  ;;  %66 = vst.msk [vmem:[#allocation2 + $0x188] sm:$0xff] %vm16_vm0, %v1242_v1  ;;  %v115_v36 = vld [vmem:[#allocation2 + $0x110] sm:$0xff]  ;;  %v116_v42 = vld [vmem:[#allocation2 + $0x118] sm:$0xff] }
  0x1a   :  { %67 = vst.msk [vmem:[#allocation2 + $0x190] sm:$0xff] %vm16_vm0, %v1242_v1  ;;  %68 = vst.msk [vmem:[#allocation2 + $0x198] sm:$0xff] %vm16_vm0, %v1242_v1  ;;  %1148 = vmatmul.mubr.msk.bf16.gmra.mrb[8].mxu0 %vm385_vm1, %v1220_v13  ;;  %1180 = vmatmul.mubr.msk.bf16.gmra.mrb[8].mxu1 %vm385_vm1, %v1221_v14  ;;  %v117_v62 = vld [vmem:[#allocation2 + $0x120] sm:$0xff]  ;;  %v118_v8 = vld [vmem:[#allocation2 + $0x128] sm:$0xff] }
  0x1b   :  { %69 = vst.msk [vmem:[#allocation2 + $0x1a0] sm:$0xff] %vm16_vm0, %v1242_v1  ;;  %70 = vst.msk [vmem:[#allocation2 + $0x1a8] sm:$0xff] %vm16_vm0, %v1242_v1  ;;  %1151 = vmatprep.mubr.msk.bf16.mxu0 %vm385_vm1, %v1222_v15  ;;  %1183 = vmatprep.mubr.msk.bf16.mxu1 %vm385_vm1, %v1223_v16  ;;  %v119_v60 = vld [vmem:[#allocation2 + $0x130] sm:$0xff]  ;;  %v120_v2 = vld [vmem:[#allocation2 + $0x138] sm:$0xff] }
  0x1c   :  { %71 = vst.msk [vmem:[#allocation2 + $0x1b0] sm:$0xff] %vm16_vm0, %v1242_v1  ;;  %72 = vst.msk [vmem:[#allocation2 + $0x1b8] sm:$0xff] %vm16_vm0, %v1242_v1 }
  0x1d   :  { %73 = vst.msk [vmem:[#allocation2 + $0x1c0] sm:$0xff] %vm16_vm0, %v1242_v1  ;;  %74 = vst.msk [vmem:[#allocation2 + $0x1c8] sm:$0xff] %vm16_vm0, %v1242_v1 }
  0x1e   :  { %75 = vst.msk [vmem:[#allocation2 + $0x1d0] sm:$0xff] %vm16_vm0, %v1242_v1  ;;  %76 = vst.msk [vmem:[#allocation2 + $0x1d8] sm:$0xff] %vm16_vm0, %v1242_v1 }
  0x1f   :  { %77 = vst.msk [vmem:[#allocation2 + $0x1e0] sm:$0xff] %vm16_vm0, %v1242_v1  ;;  %78 = vst.msk [vmem:[#allocation2 + $0x1e8] sm:$0xff] %vm16_vm0, %v1242_v1 }
  0x20   :  { %79 = vst.msk [vmem:[#allocation2 + $0x1f0] sm:$0xff] %vm16_vm0, %v1242_v1  ;;  %80 = vst.msk [vmem:[#allocation2 + $0x1f8] sm:$0xff] %vm16_vm0, %v1242_v1  ;;  %v88_v1 = vld [vmem:[#allocation2 + $0x38] sm:$0xff] }
  0x22   :  { %1152 = vmatmul.mubr.msk.bf16.gmra.mrb[12].mxu0 %vm385_vm1, %v1224_v17  ;;  %1184 = vmatmul.mubr.msk.bf16.gmra.mrb[12].mxu1 %vm385_vm1, %v1225_v18 }
  0x23   :  { %1155 = vmatprep.mubr.msk.bf16.mxu0 %vm385_vm1, %v1226_v19  ;;  %1187 = vmatprep.mubr.msk.bf16.mxu1 %vm385_vm1, %v1227_v20 }
  0x2a   :  { %1156 = vmatmul.mubr.msk.bf16.gmra.mrb[16].mxu0 %vm385_vm1, %v1228_v21  ;;  %1188 = vmatmul.mubr.msk.bf16.gmra.mrb[16].mxu1 %vm385_vm1, %v1229_v22 }
  0x2b   :  { %1159 = vmatprep.mubr.msk.bf16.mxu0 %vm385_vm1, %v1230_v23  ;;  %1191 = vmatprep.mubr.msk.bf16.mxu1 %vm385_vm1, %v1231_v24 }
  0x32   :  { %1160 = vmatmul.mubr.msk.bf16.gmra.mrb[20].mxu0 %vm385_vm1, %v1232_v25  ;;  %1192 = vmatmul.mubr.msk.bf16.gmra.mrb[20].mxu1 %vm385_vm1, %v1233_v26 }
  0x33   :  { %1163 = vmatprep.mubr.msk.bf16.mxu0 %vm385_vm1, %v1234_v27  ;;  %1195 = vmatprep.mubr.msk.bf16.mxu1 %vm385_vm1, %v1235_v28  ;;  %v91_v27 = vld [vmem:[#allocation2 + $0x50] sm:$0xff] }
  0x34   :  { %v123_v28 = vld [vmem:[#allocation2 + $0x150] sm:$0xff] }
  0x3a   :  { %1164 = vmatmul.mubr.msk.bf16.gmra.mrb[24].mxu0 %vm385_vm1, %v1236_v29  ;;  %1196 = vmatmul.mubr.msk.bf16.gmra.mrb[24].mxu1 %vm385_vm1, %v1237_v30  ;;  %v89_v29 = vld [vmem:[#allocation2 + $0x40] sm:$0xff] }
  0x3b   :  { %1167 = vmatprep.mubr.msk.bf16.mxu0 %vm385_vm1, %v1238_v31  ;;  %1199 = vmatprep.mubr.msk.bf16.mxu1 %vm385_vm1, %v1239_v32  ;;  %v121_v30 = vld [vmem:[#allocation2 + $0x140] sm:$0xff] }
  0x42   :  { %1168 = vmatmul.mubr.msk.bf16.gmra.mrb[28].mxu0 %vm385_vm1, %v1240_v33  ;;  %1200 = vmatmul.mubr.msk.bf16.gmra.mrb[28].mxu1 %vm385_vm1, %v1241_v34  ;;  %v92_v33 = vld [vmem:[#allocation2 + $0x58] sm:$0xff] }
  0x43   :  { %v124_v34 = vld [vmem:[#allocation2 + $0x158] sm:$0xff] }
  0xdd   :  { %v1141_v39 = vpop.f32.mrb[0].mxu0  ;;  %v1173_v40 = vpop.f32.mrb[0].mxu1 }
  0xde   :  { %v773_v43 = vadd.f32 %v1141_v39, %v83_v35  ;;  %v805_v44 = vadd.f32 %v1173_v40, %v115_v36  ;;  %v516_v45 = vpop.f32.mrb[1].mxu0  ;;  %v644_v46 = vpop.f32.mrb[1].mxu1  ;;  %v90_v39 = vld [vmem:[#allocation2 + $0x48] sm:$0xff] }
  0xdf   :  { %v771_v49 = vadd.f32 %v516_v45, %v81_v37  ;;  %v803_v50 = vadd.f32 %v644_v46, %v113_v38  ;;  %v1142_v51 = vpop.f32.mrb[2].mxu0  ;;  %v1174_v52 = vpop.f32.mrb[2].mxu1  ;;  %v122_v40 = vld [vmem:[#allocation2 + $0x148] sm:$0xff] }
  0xe0   :  { %838 = vst.msk [vmem:[#allocation2 + $0x10] sm:$0xff] %vm16_vm0, %v773_v43  ;;  %870 = vst.msk [vmem:[#allocation2 + $0x110] sm:$0xff] %vm16_vm0, %v805_v44  ;;  %v774_v53 = vadd.f32 %v1142_v51, %v84_v41  ;;  %v806_v54 = vadd.f32 %v1174_v52, %v116_v42  ;;  %v519_v55 = vpop.f32.mrb[3].mxu0  ;;  %v647_v56 = vpop.f32.mrb[3].mxu1 }
  0xe1   :  { %836 = vst.msk [vmem:[#allocation2] sm:$0xff] %vm16_vm0, %v771_v49  ;;  %868 = vst.msk [vmem:[#allocation2 + $0x100] sm:$0xff] %vm16_vm0, %v803_v50  ;;  %v772_v57 = vadd.f32 %v519_v55, %v82_v47  ;;  %v804_v58 = vadd.f32 %v647_v56, %v114_v48 }
  0xe2   :  { %839 = vst.msk [vmem:[#allocation2 + $0x18] sm:$0xff] %vm16_vm0, %v774_v53  ;;  %871 = vst.msk [vmem:[#allocation2 + $0x118] sm:$0xff] %vm16_vm0, %v806_v54 }
  0xe3   :  { %837 = vst.msk [vmem:[#allocation2 + $0x8] sm:$0xff] %vm16_vm0, %v772_v57  ;;  %869 = vst.msk [vmem:[#allocation2 + $0x108] sm:$0xff] %vm16_vm0, %v804_v58 }
  0xe5   :  { %v1145_v63 = vpop.f32.mrb[4].mxu0  ;;  %v1177_v0 = vpop.f32.mrb[4].mxu1 }
  0xe6   :  { %v777_v3 = vadd.f32 %v1145_v63, %v87_v59  ;;  %v809_v4 = vadd.f32 %v1177_v0, %v119_v60  ;;  %v532_v5 = vpop.f32.mrb[5].mxu0  ;;  %v660_v6 = vpop.f32.mrb[5].mxu1  ;;  %v95_v59 = vld [vmem:[#allocation2 + $0x70] sm:$0xff] }
  0xe7   :  { %v905_v9 = vld [vmem:[#allocation2 + $0x10] sm:$0xff]  ;;  %v775_v11 = vadd.f32 %v532_v5, %v85_v61  ;;  %v807_v12 = vadd.f32 %v660_v6, %v117_v62  ;;  %v1146_v13 = vpop.f32.mrb[6].mxu0  ;;  %v1178_v14 = vpop.f32.mrb[6].mxu1  ;;  %v93_v61 = vld [vmem:[#allocation2 + $0x60] sm:$0xff] }
  0xe8   :  { %v937_v10 = vld [vmem:[#allocation2 + $0x110] sm:$0xff]  ;;  %969 = vst.msk [vmem:[%s1848_s2 + $0x10] sm:$0xff] %vm16_vm0, %v905_v9  ;;  %v903_v15 = vld [vmem:[#allocation2] sm:$0xff]  ;;  %842 = vst.msk [vmem:[#allocation2 + $0x30] sm:$0xff] %vm16_vm0, %v777_v3  ;;  %v778_v17 = vadd.f32 %v1146_v13, %v88_v1  ;;  %v810_v18 = vadd.f32 %v1178_v14, %v120_v2  ;;  %v535_v19 = vpop.f32.mrb[7].mxu0  ;;  %v663_v20 = vpop.f32.mrb[7].mxu1 }
  0xe9   :  { %1001 = vst.msk [vmem:[%s1848_s2 + $0x110] sm:$0xff] %vm16_vm0, %v937_v10  ;;  %v935_v16 = vld [vmem:[#allocation2 + $0x100] sm:$0xff]  ;;  %874 = vst.msk [vmem:[#allocation2 + $0x130] sm:$0xff] %vm16_vm0, %v809_v4  ;;  %v906_v21 = vld [vmem:[#allocation2 + $0x18] sm:$0xff]  ;;  %v776_v23 = vadd.f32 %v535_v19, %v86_v7  ;;  %v808_v24 = vadd.f32 %v663_v20, %v118_v8 }
  0xea   :  { %967 = vst.msk [vmem:[%s1848_s2] sm:$0xff] %vm16_vm0, %v903_v15  ;;  %999 = vst.msk [vmem:[%s1848_s2 + $0x100] sm:$0xff] %vm16_vm0, %v935_v16  ;;  %v938_v22 = vld [vmem:[#allocation2 + $0x118] sm:$0xff]  ;;  %v904_v25 = vld [vmem:[#allocation2 + $0x8] sm:$0xff] }
  0xeb   :  { %840 = vst.msk [vmem:[#allocation2 + $0x20] sm:$0xff] %vm16_vm0, %v775_v11  ;;  %872 = vst.msk [vmem:[#allocation2 + $0x120] sm:$0xff] %vm16_vm0, %v807_v12  ;;  %v936_v26 = vld [vmem:[#allocation2 + $0x108] sm:$0xff]  ;;  %v127_v60 = vld [vmem:[#allocation2 + $0x170] sm:$0xff] }
  0xec   :  { %970 = vst.msk [vmem:[%s1848_s2 + $0x18] sm:$0xff] %vm16_vm0, %v906_v21  ;;  %1002 = vst.msk [vmem:[%s1848_s2 + $0x118] sm:$0xff] %vm16_vm0, %v938_v22  ;;  %v125_v62 = vld [vmem:[#allocation2 + $0x160] sm:$0xff]  ;;  %v96_v1 = vld [vmem:[#allocation2 + $0x78] sm:$0xff] }
  0xed   :  { %843 = vst.msk [vmem:[#allocation2 + $0x38] sm:$0xff] %vm16_vm0, %v778_v17  ;;  %875 = vst.msk [vmem:[#allocation2 + $0x138] sm:$0xff] %vm16_vm0, %v810_v18  ;;  %v1149_v31 = vpop.f32.mrb[8].mxu0  ;;  %v1181_v32 = vpop.f32.mrb[8].mxu1  ;;  %v128_v2 = vld [vmem:[#allocation2 + $0x178] sm:$0xff]  ;;  %v94_v7 = vld [vmem:[#allocation2 + $0x68] sm:$0xff] }
  0xee   :  { %968 = vst.msk [vmem:[%s1848_s2 + $0x8] sm:$0xff] %vm16_vm0, %v904_v25  ;;  %1000 = vst.msk [vmem:[%s1848_s2 + $0x108] sm:$0xff] %vm16_vm0, %v936_v26  ;;  %v781_v35 = vadd.f32 %v1149_v31, %v91_v27  ;;  %v813_v36 = vadd.f32 %v1181_v32, %v123_v28  ;;  %v548_v37 = vpop.f32.mrb[9].mxu0  ;;  %v676_v38 = vpop.f32.mrb[9].mxu1  ;;  %v126_v8 = vld [vmem:[#allocation2 + $0x168] sm:$0xff]  ;;  %v99_v27 = vld [vmem:[#allocation2 + $0x90] sm:$0xff] }
  0xef   :  { %841 = vst.msk [vmem:[#allocation2 + $0x28] sm:$0xff] %vm16_vm0, %v776_v23  ;;  %873 = vst.msk [vmem:[#allocation2 + $0x128] sm:$0xff] %vm16_vm0, %v808_v24  ;;  %v909_v41 = vld [vmem:[#allocation2 + $0x30] sm:$0xff]  ;;  %v779_v43 = vadd.f32 %v548_v37, %v89_v29  ;;  %v811_v44 = vadd.f32 %v676_v38, %v121_v30  ;;  %v1150_v45 = vpop.f32.mrb[10].mxu0  ;;  %v1182_v46 = vpop.f32.mrb[10].mxu1  ;;  %v97_v29 = vld [vmem:[#allocation2 + $0x80] sm:$0xff] }
  0xf0   :  { %v941_v42 = vld [vmem:[#allocation2 + $0x130] sm:$0xff]  ;;  %973 = vst.msk [vmem:[%s1848_s2 + $0x30] sm:$0xff] %vm16_vm0, %v909_v41  ;;  %846 = vst.msk [vmem:[#allocation2 + $0x50] sm:$0xff] %vm16_vm0, %v781_v35  ;;  %v782_v49 = vadd.f32 %v1150_v45, %v92_v33  ;;  %v814_v50 = vadd.f32 %v1182_v46, %v124_v34  ;;  %v551_v51 = vpop.f32.mrb[11].mxu0  ;;  %v679_v52 = vpop.f32.mrb[11].mxu1  ;;  %v129_v30 = vld [vmem:[#allocation2 + $0x180] sm:$0xff] }
  0xf1   :  { %1005 = vst.msk [vmem:[%s1848_s2 + $0x130] sm:$0xff] %vm16_vm0, %v941_v42  ;;  %878 = vst.msk [vmem:[#allocation2 + $0x150] sm:$0xff] %vm16_vm0, %v813_v36  ;;  %v780_v55 = vadd.f32 %v551_v51, %v90_v39  ;;  %v812_v56 = vadd.f32 %v679_v52, %v122_v40  ;;  %v131_v28 = vld [vmem:[#allocation2 + $0x190] sm:$0xff]  ;;  %v100_v33 = vld [vmem:[#allocation2 + $0x98] sm:$0xff] }
  0xf2   :  { %v907_v47 = vld [vmem:[#allocation2 + $0x20] sm:$0xff]  ;;  %844 = vst.msk [vmem:[#allocation2 + $0x40] sm:$0xff] %vm16_vm0, %v779_v43  ;;  %876 = vst.msk [vmem:[#allocation2 + $0x140] sm:$0xff] %vm16_vm0, %v811_v44  ;;  %v132_v34 = vld [vmem:[#allocation2 + $0x198] sm:$0xff] }
  0xf3   :  { %v939_v48 = vld [vmem:[#allocation2 + $0x120] sm:$0xff]  ;;  %971 = vst.msk [vmem:[%s1848_s2 + $0x20] sm:$0xff] %vm16_vm0, %v907_v47  ;;  %847 = vst.msk [vmem:[#allocation2 + $0x58] sm:$0xff] %vm16_vm0, %v782_v49  ;;  %v98_v39 = vld [vmem:[#allocation2 + $0x88] sm:$0xff] }
  0xf4   :  { %1003 = vst.msk [vmem:[%s1848_s2 + $0x120] sm:$0xff] %vm16_vm0, %v939_v48  ;;  %v910_v53 = vld [vmem:[#allocation2 + $0x38] sm:$0xff]  ;;  %879 = vst.msk [vmem:[#allocation2 + $0x158] sm:$0xff] %vm16_vm0, %v814_v50  ;;  %v130_v40 = vld [vmem:[#allocation2 + $0x188] sm:$0xff] }
  0xf5   :  { %v942_v54 = vld [vmem:[#allocation2 + $0x138] sm:$0xff]  ;;  %974 = vst.msk [vmem:[%s1848_s2 + $0x38] sm:$0xff] %vm16_vm0, %v910_v53  ;;  %845 = vst.msk [vmem:[#allocation2 + $0x48] sm:$0xff] %vm16_vm0, %v780_v55  ;;  %v1153_v63 = vpop.f32.mrb[12].mxu0  ;;  %v1185_v0 = vpop.f32.mrb[12].mxu1 }
  0xf6   :  { %1006 = vst.msk [vmem:[%s1848_s2 + $0x138] sm:$0xff] %vm16_vm0, %v942_v54  ;;  %v908_v57 = vld [vmem:[#allocation2 + $0x28] sm:$0xff]  ;;  %877 = vst.msk [vmem:[#allocation2 + $0x148] sm:$0xff] %vm16_vm0, %v812_v56  ;;  %v785_v3 = vadd.f32 %v1153_v63, %v95_v59  ;;  %v817_v4 = vadd.f32 %v1185_v0, %v127_v60  ;;  %v564_v5 = vpop.f32.mrb[13].mxu0  ;;  %v692_v6 = vpop.f32.mrb[13].mxu1  ;;  %v103_v59 = vld [vmem:[#allocation2 + $0xb0] sm:$0xff] }
  0xf7   :  { %v940_v58 = vld [vmem:[#allocation2 + $0x128] sm:$0xff]  ;;  %972 = vst.msk [vmem:[%s1848_s2 + $0x28] sm:$0xff] %vm16_vm0, %v908_v57  ;;  %v913_v9 = vld [vmem:[#allocation2 + $0x50] sm:$0xff]  ;;  %v783_v11 = vadd.f32 %v564_v5, %v93_v61  ;;  %v815_v12 = vadd.f32 %v692_v6, %v125_v62  ;;  %v1154_v13 = vpop.f32.mrb[14].mxu0  ;;  %v1186_v14 = vpop.f32.mrb[14].mxu1  ;;  %v101_v61 = vld [vmem:[#allocation2 + $0xa0] sm:$0xff] }
  0xf8   :  { %1004 = vst.msk [vmem:[%s1848_s2 + $0x128] sm:$0xff] %vm16_vm0, %v940_v58  ;;  %v945_v10 = vld [vmem:[#allocation2 + $0x150] sm:$0xff]  ;;  %977 = vst.msk [vmem:[%s1848_s2 + $0x50] sm:$0xff] %vm16_vm0, %v913_v9  ;;  %v786_v17 = vadd.f32 %v1154_v13, %v96_v1  ;;  %v818_v18 = vadd.f32 %v1186_v14, %v128_v2  ;;  %v567_v19 = vpop.f32.mrb[15].mxu0  ;;  %v695_v20 = vpop.f32.mrb[15].mxu1  ;;  %v133_v62 = vld [vmem:[#allocation2 + $0x1a0] sm:$0xff] }
  0xf9   :  { %1009 = vst.msk [vmem:[%s1848_s2 + $0x150] sm:$0xff] %vm16_vm0, %v945_v10  ;;  %v911_v15 = vld [vmem:[#allocation2 + $0x40] sm:$0xff]  ;;  %850 = vst.msk [vmem:[#allocation2 + $0x70] sm:$0xff] %vm16_vm0, %v785_v3  ;;  %v784_v23 = vadd.f32 %v567_v19, %v94_v7  ;;  %v816_v24 = vadd.f32 %v695_v20, %v126_v8  ;;  %v135_v60 = vld [vmem:[#allocation2 + $0x1b0] sm:$0xff] }
  0xfa   :  { %v943_v16 = vld [vmem:[#allocation2 + $0x140] sm:$0xff]  ;;  %882 = vst.msk [vmem:[#allocation2 + $0x170] sm:$0xff] %vm16_vm0, %v817_v4  ;;  %975 = vst.msk [vmem:[%s1848_s2 + $0x40] sm:$0xff] %vm16_vm0, %v911_v15  ;;  %v914_v21 = vld [vmem:[#allocation2 + $0x58] sm:$0xff] }
  0xfb   :  { %1007 = vst.msk [vmem:[%s1848_s2 + $0x140] sm:$0xff] %vm16_vm0, %v943_v16  ;;  %v946_v22 = vld [vmem:[#allocation2 + $0x158] sm:$0xff]  ;;  %848 = vst.msk [vmem:[#allocation2 + $0x60] sm:$0xff] %vm16_vm0, %v783_v11  ;;  %v102_v7 = vld [vmem:[#allocation2 + $0xa8] sm:$0xff] }
  0xfc   :  { %880 = vst.msk [vmem:[#allocation2 + $0x160] sm:$0xff] %vm16_vm0, %v815_v12  ;;  %978 = vst.msk [vmem:[%s1848_s2 + $0x58] sm:$0xff] %vm16_vm0, %v914_v21  ;;  %v912_v25 = vld [vmem:[#allocation2 + $0x48] sm:$0xff]  ;;  %v104_v1 = vld [vmem:[#allocation2 + $0xb8] sm:$0xff] }
  0xfd   :  { %1010 = vst.msk [vmem:[%s1848_s2 + $0x158] sm:$0xff] %vm16_vm0, %v946_v22  ;;  %v944_v26 = vld [vmem:[#allocation2 + $0x148] sm:$0xff]  ;;  %851 = vst.msk [vmem:[#allocation2 + $0x78] sm:$0xff] %vm16_vm0, %v786_v17  ;;  %v1157_v31 = vpop.f32.mrb[16].mxu0  ;;  %v1189_v32 = vpop.f32.mrb[16].mxu1  ;;  %v136_v2 = vld [vmem:[#allocation2 + $0x1b8] sm:$0xff] }
  0xfe   :  { %883 = vst.msk [vmem:[#allocation2 + $0x178] sm:$0xff] %vm16_vm0, %v818_v18  ;;  %976 = vst.msk [vmem:[%s1848_s2 + $0x48] sm:$0xff] %vm16_vm0, %v912_v25  ;;  %v789_v35 = vadd.f32 %v1157_v31, %v99_v27  ;;  %v821_v36 = vadd.f32 %v1189_v32, %v131_v28  ;;  %v580_v37 = vpop.f32.mrb[17].mxu0  ;;  %v708_v38 = vpop.f32.mrb[17].mxu1  ;;  %v134_v8 = vld [vmem:[#allocation2 + $0x1a8] sm:$0xff]  ;;  %v107_v27 = vld [vmem:[#allocation2 + $0xd0] sm:$0xff] }
  0xff   :  { %1008 = vst.msk [vmem:[%s1848_s2 + $0x148] sm:$0xff] %vm16_vm0, %v944_v26  ;;  %849 = vst.msk [vmem:[#allocation2 + $0x68] sm:$0xff] %vm16_vm0, %v784_v23  ;;  %v787_v43 = vadd.f32 %v580_v37, %v97_v29  ;;  %v819_v44 = vadd.f32 %v708_v38, %v129_v30  ;;  %v1158_v45 = vpop.f32.mrb[18].mxu0  ;;  %v1190_v46 = vpop.f32.mrb[18].mxu1  ;;  %v139_v28 = vld [vmem:[#allocation2 + $0x1d0] sm:$0xff]  ;;  %v105_v29 = vld [vmem:[#allocation2 + $0xc0] sm:$0xff] }
 0x100   :  { %881 = vst.msk [vmem:[#allocation2 + $0x168] sm:$0xff] %vm16_vm0, %v816_v24  ;;  %v917_v41 = vld [vmem:[#allocation2 + $0x70] sm:$0xff]  ;;  %854 = vst.msk [vmem:[#allocation2 + $0x90] sm:$0xff] %vm16_vm0, %v789_v35  ;;  %v790_v49 = vadd.f32 %v1158_v45, %v100_v33  ;;  %v822_v50 = vadd.f32 %v1190_v46, %v132_v34  ;;  %v583_v51 = vpop.f32.mrb[19].mxu0  ;;  %v711_v52 = vpop.f32.mrb[19].mxu1  ;;  %v137_v30 = vld [vmem:[#allocation2 + $0x1c0] sm:$0xff] }
 0x101   :  { %v949_v42 = vld [vmem:[#allocation2 + $0x170] sm:$0xff]  ;;  %981 = vst.msk [vmem:[%s1848_s2 + $0x70] sm:$0xff] %vm16_vm0, %v917_v41  ;;  %886 = vst.msk [vmem:[#allocation2 + $0x190] sm:$0xff] %vm16_vm0, %v821_v36  ;;  %v788_v55 = vadd.f32 %v583_v51, %v98_v39  ;;  %v820_v56 = vadd.f32 %v711_v52, %v130_v40  ;;  %v108_v33 = vld [vmem:[#allocation2 + $0xd8] sm:$0xff] }
 0x102   :  { %1013 = vst.msk [vmem:[%s1848_s2 + $0x170] sm:$0xff] %vm16_vm0, %v949_v42  ;;  %v915_v47 = vld [vmem:[#allocation2 + $0x60] sm:$0xff]  ;;  %852 = vst.msk [vmem:[#allocation2 + $0x80] sm:$0xff] %vm16_vm0, %v787_v43  ;;  %v140_v34 = vld [vmem:[#allocation2 + $0x1d8] sm:$0xff] }
 0x103   :  { %v947_v48 = vld [vmem:[#allocation2 + $0x160] sm:$0xff]  ;;  %979 = vst.msk [vmem:[%s1848_s2 + $0x60] sm:$0xff] %vm16_vm0, %v915_v47  ;;  %884 = vst.msk [vmem:[#allocation2 + $0x180] sm:$0xff] %vm16_vm0, %v819_v44  ;;  %v106_v39 = vld [vmem:[#allocation2 + $0xc8] sm:$0xff] }
 0x104   :  { %1011 = vst.msk [vmem:[%s1848_s2 + $0x160] sm:$0xff] %vm16_vm0, %v947_v48  ;;  %v918_v53 = vld [vmem:[#allocation2 + $0x78] sm:$0xff]  ;;  %855 = vst.msk [vmem:[#allocation2 + $0x98] sm:$0xff] %vm16_vm0, %v790_v49  ;;  %v138_v40 = vld [vmem:[#allocation2 + $0x1c8] sm:$0xff] }
 0x105   :  { %v950_v54 = vld [vmem:[#allocation2 + $0x178] sm:$0xff]  ;;  %982 = vst.msk [vmem:[%s1848_s2 + $0x78] sm:$0xff] %vm16_vm0, %v918_v53  ;;  %887 = vst.msk [vmem:[#allocation2 + $0x198] sm:$0xff] %vm16_vm0, %v822_v50  ;;  %v1161_v63 = vpop.f32.mrb[20].mxu0  ;;  %v1193_v0 = vpop.f32.mrb[20].mxu1 }
 0x106   :  { %1014 = vst.msk [vmem:[%s1848_s2 + $0x178] sm:$0xff] %vm16_vm0, %v950_v54  ;;  %v916_v57 = vld [vmem:[#allocation2 + $0x68] sm:$0xff]  ;;  %853 = vst.msk [vmem:[#allocation2 + $0x88] sm:$0xff] %vm16_vm0, %v788_v55  ;;  %v793_v3 = vadd.f32 %v1161_v63, %v103_v59  ;;  %v825_v4 = vadd.f32 %v1193_v0, %v135_v60  ;;  %v596_v5 = vpop.f32.mrb[21].mxu0  ;;  %v724_v6 = vpop.f32.mrb[21].mxu1  ;;  %v111_v59 = vld [vmem:[#allocation2 + $0xf0] sm:$0xff] }
 0x107   :  { %v948_v58 = vld [vmem:[#allocation2 + $0x168] sm:$0xff]  ;;  %980 = vst.msk [vmem:[%s1848_s2 + $0x68] sm:$0xff] %vm16_vm0, %v916_v57  ;;  %885 = vst.msk [vmem:[#allocation2 + $0x188] sm:$0xff] %vm16_vm0, %v820_v56  ;;  %v921_v9 = vld [vmem:[#allocation2 + $0x90] sm:$0xff]  ;;  %v791_v11 = vadd.f32 %v596_v5, %v101_v61  ;;  %v823_v12 = vadd.f32 %v724_v6, %v133_v62  ;;  %v1162_v13 = vpop.f32.mrb[22].mxu0  ;;  %v1194_v14 = vpop.f32.mrb[22].mxu1 }
 0x108   :  { %1012 = vst.msk [vmem:[%s1848_s2 + $0x168] sm:$0xff] %vm16_vm0, %v948_v58  ;;  %v953_v10 = vld [vmem:[#allocation2 + $0x190] sm:$0xff]  ;;  %985 = vst.msk [vmem:[%s1848_s2 + $0x90] sm:$0xff] %vm16_vm0, %v921_v9  ;;  %v794_v17 = vadd.f32 %v1162_v13, %v104_v1  ;;  %v826_v18 = vadd.f32 %v1194_v14, %v136_v2  ;;  %v599_v19 = vpop.f32.mrb[23].mxu0  ;;  %v727_v20 = vpop.f32.mrb[23].mxu1  ;;  %v109_v61 = vld [vmem:[#allocation2 + $0xe0] sm:$0xff] }
 0x109   :  { %1017 = vst.msk [vmem:[%s1848_s2 + $0x190] sm:$0xff] %vm16_vm0, %v953_v10  ;;  %v919_v15 = vld [vmem:[#allocation2 + $0x80] sm:$0xff]  ;;  %858 = vst.msk [vmem:[#allocation2 + $0xb0] sm:$0xff] %vm16_vm0, %v793_v3  ;;  %v792_v23 = vadd.f32 %v599_v19, %v102_v7  ;;  %v824_v24 = vadd.f32 %v727_v20, %v134_v8  ;;  %v143_v60 = vld [vmem:[#allocation2 + $0x1f0] sm:$0xff] }
 0x10a   :  { %v951_v16 = vld [vmem:[#allocation2 + $0x180] sm:$0xff]  ;;  %890 = vst.msk [vmem:[#allocation2 + $0x1b0] sm:$0xff] %vm16_vm0, %v825_v4  ;;  %983 = vst.msk [vmem:[%s1848_s2 + $0x80] sm:$0xff] %vm16_vm0, %v919_v15  ;;  %v112_v1 = vld [vmem:[#allocation2 + $0xf8] sm:$0xff] }
 0x10b   :  { %1015 = vst.msk [vmem:[%s1848_s2 + $0x180] sm:$0xff] %vm16_vm0, %v951_v16  ;;  %v922_v21 = vld [vmem:[#allocation2 + $0x98] sm:$0xff]  ;;  %856 = vst.msk [vmem:[#allocation2 + $0xa0] sm:$0xff] %vm16_vm0, %v791_v11  ;;  %v141_v62 = vld [vmem:[#allocation2 + $0x1e0] sm:$0xff] }
 0x10c   :  { %v954_v22 = vld [vmem:[#allocation2 + $0x198] sm:$0xff]  ;;  %888 = vst.msk [vmem:[#allocation2 + $0x1a0] sm:$0xff] %vm16_vm0, %v823_v12  ;;  %986 = vst.msk [vmem:[%s1848_s2 + $0x98] sm:$0xff] %vm16_vm0, %v922_v21  ;;  %v110_v7 = vld [vmem:[#allocation2 + $0xe8] sm:$0xff] }
 0x10d   :  { %1018 = vst.msk [vmem:[%s1848_s2 + $0x198] sm:$0xff] %vm16_vm0, %v954_v22  ;;  %v920_v25 = vld [vmem:[#allocation2 + $0x88] sm:$0xff]  ;;  %859 = vst.msk [vmem:[#allocation2 + $0xb8] sm:$0xff] %vm16_vm0, %v794_v17  ;;  %v1165_v31 = vpop.f32.mrb[24].mxu0  ;;  %v1197_v32 = vpop.f32.mrb[24].mxu1  ;;  %v144_v2 = vld [vmem:[#allocation2 + $0x1f8] sm:$0xff] }
 0x10e   :  { %v952_v26 = vld [vmem:[#allocation2 + $0x188] sm:$0xff]  ;;  %891 = vst.msk [vmem:[#allocation2 + $0x1b8] sm:$0xff] %vm16_vm0, %v826_v18  ;;  %984 = vst.msk [vmem:[%s1848_s2 + $0x88] sm:$0xff] %vm16_vm0, %v920_v25  ;;  %v797_v35 = vadd.f32 %v1165_v31, %v107_v27  ;;  %v829_v36 = vadd.f32 %v1197_v32, %v139_v28  ;;  %v612_v37 = vpop.f32.mrb[25].mxu0  ;;  %v740_v38 = vpop.f32.mrb[25].mxu1 }
 0x10f   :  { %1016 = vst.msk [vmem:[%s1848_s2 + $0x188] sm:$0xff] %vm16_vm0, %v952_v26  ;;  %857 = vst.msk [vmem:[#allocation2 + $0xa8] sm:$0xff] %vm16_vm0, %v792_v23  ;;  %v795_v43 = vadd.f32 %v612_v37, %v105_v29  ;;  %v827_v44 = vadd.f32 %v740_v38, %v137_v30  ;;  %v1166_v45 = vpop.f32.mrb[26].mxu0  ;;  %v1198_v46 = vpop.f32.mrb[26].mxu1  ;;  %v142_v8 = vld [vmem:[#allocation2 + $0x1e8] sm:$0xff] }
 0x110   :  { %889 = vst.msk [vmem:[#allocation2 + $0x1a8] sm:$0xff] %vm16_vm0, %v824_v24  ;;  %v925_v41 = vld [vmem:[#allocation2 + $0xb0] sm:$0xff]  ;;  %862 = vst.msk [vmem:[#allocation2 + $0xd0] sm:$0xff] %vm16_vm0, %v797_v35  ;;  %v798_v49 = vadd.f32 %v1166_v45, %v108_v33  ;;  %v830_v50 = vadd.f32 %v1198_v46, %v140_v34  ;;  %v615_v51 = vpop.f32.mrb[27].mxu0  ;;  %v743_v52 = vpop.f32.mrb[27].mxu1 }
 0x111   :  { %v957_v42 = vld [vmem:[#allocation2 + $0x1b0] sm:$0xff]  ;;  %989 = vst.msk [vmem:[%s1848_s2 + $0xb0] sm:$0xff] %vm16_vm0, %v925_v41  ;;  %894 = vst.msk [vmem:[#allocation2 + $0x1d0] sm:$0xff] %vm16_vm0, %v829_v36  ;;  %v796_v55 = vadd.f32 %v615_v51, %v106_v39  ;;  %v828_v56 = vadd.f32 %v743_v52, %v138_v40 }
 0x112   :  { %1021 = vst.msk [vmem:[%s1848_s2 + $0x1b0] sm:$0xff] %vm16_vm0, %v957_v42  ;;  %v923_v47 = vld [vmem:[#allocation2 + $0xa0] sm:$0xff]  ;;  %860 = vst.msk [vmem:[#allocation2 + $0xc0] sm:$0xff] %vm16_vm0, %v795_v43 }
 0x113   :  { %v955_v48 = vld [vmem:[#allocation2 + $0x1a0] sm:$0xff]  ;;  %987 = vst.msk [vmem:[%s1848_s2 + $0xa0] sm:$0xff] %vm16_vm0, %v923_v47  ;;  %892 = vst.msk [vmem:[#allocation2 + $0x1c0] sm:$0xff] %vm16_vm0, %v827_v44 }
 0x114   :  { %1019 = vst.msk [vmem:[%s1848_s2 + $0x1a0] sm:$0xff] %vm16_vm0, %v955_v48  ;;  %v926_v53 = vld [vmem:[#allocation2 + $0xb8] sm:$0xff]  ;;  %863 = vst.msk [vmem:[#allocation2 + $0xd8] sm:$0xff] %vm16_vm0, %v798_v49 }
 0x115   :  { %v958_v54 = vld [vmem:[#allocation2 + $0x1b8] sm:$0xff]  ;;  %990 = vst.msk [vmem:[%s1848_s2 + $0xb8] sm:$0xff] %vm16_vm0, %v926_v53  ;;  %895 = vst.msk [vmem:[#allocation2 + $0x1d8] sm:$0xff] %vm16_vm0, %v830_v50  ;;  %v1169_v63 = vpop.f32.mrb[28].mxu0  ;;  %v1201_v0 = vpop.f32.mrb[28].mxu1 }
 0x116   :  { %1022 = vst.msk [vmem:[%s1848_s2 + $0x1b8] sm:$0xff] %vm16_vm0, %v958_v54  ;;  %v924_v57 = vld [vmem:[#allocation2 + $0xa8] sm:$0xff]  ;;  %861 = vst.msk [vmem:[#allocation2 + $0xc8] sm:$0xff] %vm16_vm0, %v796_v55  ;;  %v801_v3 = vadd.f32 %v1169_v63, %v111_v59  ;;  %v833_v4 = vadd.f32 %v1201_v0, %v143_v60  ;;  %v628_v5 = vpop.f32.mrb[29].mxu0  ;;  %v756_v6 = vpop.f32.mrb[29].mxu1 }
 0x117   :  { %v956_v58 = vld [vmem:[#allocation2 + $0x1a8] sm:$0xff]  ;;  %988 = vst.msk [vmem:[%s1848_s2 + $0xa8] sm:$0xff] %vm16_vm0, %v924_v57  ;;  %893 = vst.msk [vmem:[#allocation2 + $0x1c8] sm:$0xff] %vm16_vm0, %v828_v56  ;;  %v929_v9 = vld [vmem:[#allocation2 + $0xd0] sm:$0xff]  ;;  %v799_v11 = vadd.f32 %v628_v5, %v109_v61  ;;  %v831_v12 = vadd.f32 %v756_v6, %v141_v62  ;;  %v1170_v13 = vpop.f32.mrb[30].mxu0  ;;  %v1202_v14 = vpop.f32.mrb[30].mxu1 }
 0x118   :  { %1020 = vst.msk [vmem:[%s1848_s2 + $0x1a8] sm:$0xff] %vm16_vm0, %v956_v58  ;;  %v961_v10 = vld [vmem:[#allocation2 + $0x1d0] sm:$0xff]  ;;  %993 = vst.msk [vmem:[%s1848_s2 + $0xd0] sm:$0xff] %vm16_vm0, %v929_v9  ;;  %v802_v17 = vadd.f32 %v1170_v13, %v112_v1  ;;  %v834_v18 = vadd.f32 %v1202_v14, %v144_v2  ;;  %v631_v19 = vpop.f32.mrb[31].mxu0  ;;  %v759_v20 = vpop.f32.mrb[31].mxu1 }
 0x119   :  { %1025 = vst.msk [vmem:[%s1848_s2 + $0x1d0] sm:$0xff] %vm16_vm0, %v961_v10  ;;  %v927_v15 = vld [vmem:[#allocation2 + $0xc0] sm:$0xff]  ;;  %866 = vst.msk [vmem:[#allocation2 + $0xf0] sm:$0xff] %vm16_vm0, %v801_v3  ;;  %v800_v23 = vadd.f32 %v631_v19, %v110_v7  ;;  %v832_v24 = vadd.f32 %v759_v20, %v142_v8 }
 0x11a   :  { %v959_v16 = vld [vmem:[#allocation2 + $0x1c0] sm:$0xff]  ;;  %898 = vst.msk [vmem:[#allocation2 + $0x1f0] sm:$0xff] %vm16_vm0, %v833_v4  ;;  %991 = vst.msk [vmem:[%s1848_s2 + $0xc0] sm:$0xff] %vm16_vm0, %v927_v15 }
 0x11b   :  { %1023 = vst.msk [vmem:[%s1848_s2 + $0x1c0] sm:$0xff] %vm16_vm0, %v959_v16  ;;  %v930_v21 = vld [vmem:[#allocation2 + $0xd8] sm:$0xff]  ;;  %864 = vst.msk [vmem:[#allocation2 + $0xe0] sm:$0xff] %vm16_vm0, %v799_v11 }
 0x11c   :  { %v962_v22 = vld [vmem:[#allocation2 + $0x1d8] sm:$0xff]  ;;  %896 = vst.msk [vmem:[#allocation2 + $0x1e0] sm:$0xff] %vm16_vm0, %v831_v12  ;;  %994 = vst.msk [vmem:[%s1848_s2 + $0xd8] sm:$0xff] %vm16_vm0, %v930_v21 }
 0x11d   :  { %1026 = vst.msk [vmem:[%s1848_s2 + $0x1d8] sm:$0xff] %vm16_vm0, %v962_v22  ;;  %v928_v25 = vld [vmem:[#allocation2 + $0xc8] sm:$0xff]  ;;  %867 = vst.msk [vmem:[#allocation2 + $0xf8] sm:$0xff] %vm16_vm0, %v802_v17 }
 0x11e   :  { %v960_v26 = vld [vmem:[#allocation2 + $0x1c8] sm:$0xff]  ;;  %899 = vst.msk [vmem:[#allocation2 + $0x1f8] sm:$0xff] %vm16_vm0, %v834_v18  ;;  %992 = vst.msk [vmem:[%s1848_s2 + $0xc8] sm:$0xff] %vm16_vm0, %v928_v25 }
 0x11f   :  { %1024 = vst.msk [vmem:[%s1848_s2 + $0x1c8] sm:$0xff] %vm16_vm0, %v960_v26  ;;  %865 = vst.msk [vmem:[#allocation2 + $0xe8] sm:$0xff] %vm16_vm0, %v800_v23 }
 0x120   :  { %897 = vst.msk [vmem:[#allocation2 + $0x1e8] sm:$0xff] %vm16_vm0, %v832_v24  ;;  %v933_v27 = vld [vmem:[#allocation2 + $0xf0] sm:$0xff] }
 0x121   :  { %v965_v28 = vld [vmem:[#allocation2 + $0x1f0] sm:$0xff]  ;;  %997 = vst.msk [vmem:[%s1848_s2 + $0xf0] sm:$0xff] %vm16_vm0, %v933_v27 }
 0x122   :  { %1029 = vst.msk [vmem:[%s1848_s2 + $0x1f0] sm:$0xff] %vm16_vm0, %v965_v28  ;;  %v931_v29 = vld [vmem:[#allocation2 + $0xe0] sm:$0xff] }
 0x123   :  { %v963_v30 = vld [vmem:[#allocation2 + $0x1e0] sm:$0xff]  ;;  %995 = vst.msk [vmem:[%s1848_s2 + $0xe0] sm:$0xff] %vm16_vm0, %v931_v29 }
 0x124   :  { %1027 = vst.msk [vmem:[%s1848_s2 + $0x1e0] sm:$0xff] %vm16_vm0, %v963_v30  ;;  %v934_v31 = vld [vmem:[#allocation2 + $0xf8] sm:$0xff] }
 0x125   :  { %v966_v32 = vld [vmem:[#allocation2 + $0x1f8] sm:$0xff]  ;;  %998 = vst.msk [vmem:[%s1848_s2 + $0xf8] sm:$0xff] %vm16_vm0, %v934_v31 }
 0x126   :  { %1030 = vst.msk [vmem:[%s1848_s2 + $0x1f8] sm:$0xff] %vm16_vm0, %v966_v32  ;;  %v932_v33 = vld [vmem:[#allocation2 + $0xe8] sm:$0xff] }
 0x127   :  { %v964_v34 = vld [vmem:[#allocation2 + $0x1e8] sm:$0xff]  ;;  %996 = vst.msk [vmem:[%s1848_s2 + $0xe8] sm:$0xff] %vm16_vm0, %v932_v33 }
 0x128   :  { %1028 = vst.msk [vmem:[%s1848_s2 + $0x1e8] sm:$0xff] %vm16_vm0, %v964_v34 }

</bundles_post_ra>
